<compile_context>
chip_gen: v6e
topology: v6e:2x2x1
jax: 0.10.0
libtpu: 0.0.40
codegen_flags: <defaults>
</compile_context>

<pallas_src>
import functools

import jax
import jax.numpy as jnp
from jax.experimental import pallas as pl
from jax.experimental.pallas import tpu as pltpu

_LANE = 128


def _round_up(x, n):
    return ((x + n - 1) // n) * n


def _vmem_capacity_bytes():
    try:
        return int(pltpu.get_tpu_info().vmem_capacity_bytes)
    except Exception:
        return 64 * 1024 * 1024  # conservative (v7x-sized) fallback


def _pick_blocks(nq, nkv, num_heads, head_dim, itemsize, min_sub, vmem_cap):
    """Generation-aware q/kv block sizes.

    Counts double-buffered q/k/v/out blocks, the f32 softmax scratch
    (m/l/acc, lane-padded) and the transient f32 (H, bq, bkv) score/prob
    intermediates against ~55% of the chip's VMEM capacity.
    """
    hd_l = _round_up(head_dim, _LANE)

    def need(bq, bkv):
        q_blk = 2 * num_heads * bq * hd_l * itemsize            # double-buffered
        kv_blk = 2 * 2 * num_heads * bkv * hd_l * itemsize       # K and V
        o_blk = 2 * num_heads * bq * hd_l * itemsize
        scratch = num_heads * bq * (2 * _LANE + hd_l) * 4        # m, l, acc (f32)
        interm = int(2.5 * num_heads * bq * _round_up(bkv, _LANE) * 4)
        return q_blk + kv_blk + o_blk + scratch + interm

    budget = int(0.55 * vmem_cap)
    bq = min(256, _round_up(nq, min_sub))      # review: prefer >=128/256 rows
    bkv = min(512, _round_up(nkv, min_sub))
    while need(bq, bkv) > budget and bkv > max(min_sub, 128):
        bkv = max(min_sub, _round_up(bkv // 2, min_sub))
    while need(bq, bkv) > budget and bq > max(min_sub, 128):
        bq = max(min_sub, _round_up(bq // 2, min_sub))
    return bq, bkv


def _flash_attn_kernel(q_ref, k_ref, v_ref, o_ref, m_scr, l_scr, acc_scr,
                       *, kv_len, block_kv):
    ki = pl.program_id(2)

    @pl.when(ki == 0)
    def _init():
        m_scr[...] = jnp.full(m_scr.shape, -jnp.inf, dtype=m_scr.dtype)
        l_scr[...] = jnp.zeros(l_scr.shape, dtype=l_scr.dtype)
        acc_scr[...] = jnp.zeros(acc_scr.shape, dtype=acc_scr.dtype)

    q = q_ref[0]                     # (H, bq,  hd)  compute dtype (bf16/f32)
    k = k_ref[0]                     # (H, bkv, hd)
    v = v_ref[0]                     # (H, bkv, hd)

    # Scores: head-batched Q.K^T, contracting the LAST axis of both operands
    # (no explicit transpose).  The softmax scale is already folded into Wq.
    s = jnp.einsum('hqd,hkd->hqk', q, k,
                   preferred_element_type=jnp.float32)    # (H, bq, bkv) f32

    if kv_len % block_kv != 0:       # static: padding exists on the last block
        col = jax.lax.broadcasted_iota(jnp.int32, s.shape, dimension=2)
        s = jnp.where(ki * block_kv + col < kv_len, s, -1e30)
    # TODO(synk): the module's optional boolean `mask` argument is not
    # implemented (mask=None path only); it would be applied here the same way.

    m_prev = m_scr[...]                                    # (H, bq, 1)
    m_new = jnp.maximum(m_prev, jnp.max(s, axis=-1, keepdims=True))
    alpha = jnp.exp(m_prev - m_new)                        # rescale of old stats
    p = jnp.exp(s - m_new)                                 # (H, bq, bkv) f32
    l_scr[...] = alpha * l_scr[...] + jnp.sum(p, axis=-1, keepdims=True)
    acc_scr[...] = alpha * acc_scr[...] + jnp.einsum(
        'hqk,hkd->hqd', p.astype(v.dtype), v,
        preferred_element_type=jnp.float32)
    m_scr[...] = m_new

    @pl.when(ki == pl.num_programs(2) - 1)
    def _finalize():
        # Exact divide (review concern about the approximate reciprocal).
        o_ref[0] = (acc_scr[...] / l_scr[...]).astype(o_ref.dtype)


def mha_layer_forward(xq, xk, xv, params, *, num_heads, head_dim,
                      mxu_dtype=jnp.bfloat16):
    """Forward pass of tnp MultiHeadAttentionLayer (p_dropout=0, mask=None)."""
    m, nq, dqk = xq.shape
    _, nkv, _ = xk.shape
    wq, wk, wv, wo, bo = params           # (in, out) layout, bias (1, dv)
    inner = num_heads * head_dim
    scale = float(head_dim) ** -0.5
    out_dtype = xq.dtype

    compute = jnp.dtype(mxu_dtype)
    itemsize = compute.itemsize
    min_sub = 8 if itemsize == 4 else 16  # sublane minimum for the block dtype

    # ---- Projections as single wide GEMMs (XLA, full-width MXU), once. ----
    def proj(x, w):
        y = jnp.einsum('mnd,de->mne', x.astype(compute), w.astype(compute),
                       preferred_element_type=jnp.float32)
        return y.astype(compute)

    q = proj(xq, wq * scale)              # softmax scale folded into Wq
    k = proj(xk, wk)
    v = proj(xv, wv)

    # ---- Head-major layout + padding for the flash-attention kernel. ----
    vmem_cap = _vmem_capacity_bytes()
    bq, bkv = _pick_blocks(nq, nkv, num_heads, head_dim, itemsize, min_sub,
                           vmem_cap)
    # Keep both v7x TensorCores busy: guarantee >=2 "parallel" grid steps.
    if m * pl.cdiv(nq, bq) < 2 and bq > min_sub:
        bq = max(min_sub, _round_up(bq // 2, min_sub))
    nq_pad = _round_up(nq, bq)
    nkv_pad = _round_up(nkv, bkv)

    def to_heads(t, n, n_pad):
        t = t.reshape(m, n, num_heads, head_dim).transpose(0, 2, 1, 3)
        if n_pad != n:
            t = jnp.pad(t, ((0, 0), (0, 0), (0, n_pad - n), (0, 0)))
        return t

    q_h = to_heads(q, nq, nq_pad)         # (m, H, nq_pad,  hd)
    k_h = to_heads(k, nkv, nkv_pad)       # (m, H, nkv_pad, hd)
    v_h = to_heads(v, nkv, nkv_pad)

    grid = (m, nq_pad // bq, nkv_pad // bkv)
    kernel = functools.partial(_flash_attn_kernel, kv_len=nkv, block_kv=bkv)

    attn = pl.pallas_call(
        kernel,
        out_shape=jax.ShapeDtypeStruct((m, num_heads, nq_pad, head_dim),
                                       compute),
        grid_spec=pltpu.PrefetchScalarGridSpec(
            num_scalar_prefetch=0,
            grid=grid,
            in_specs=[
                pl.BlockSpec((1, num_heads, bq, head_dim),
                             lambda b, qi, ki: (b, 0, qi, 0)),
                pl.BlockSpec((1, num_heads, bkv, head_dim),
                             lambda b, qi, ki: (b, 0, ki, 0)),
                pl.BlockSpec((1, num_heads, bkv, head_dim),
                             lambda b, qi, ki: (b, 0, ki, 0)),
            ],
            out_specs=pl.BlockSpec((1, num_heads, bq, head_dim),
                                   lambda b, qi, ki: (b, 0, qi, 0)),
            scratch_shapes=[
                pltpu.VMEM((num_heads, bq, 1), jnp.float32),          # running max
                pltpu.VMEM((num_heads, bq, 1), jnp.float32),          # running sum
                pltpu.VMEM((num_heads, bq, head_dim), jnp.float32),   # o accum
            ],
        ),
        compiler_params=pltpu.CompilerParams(
            dimension_semantics=("parallel", "parallel", "arbitrary"),
            vmem_limit_bytes=min(int(0.85 * vmem_cap), 100 * 1024 * 1024),
        ),
    )(q_h, k_h, v_h)

    # ---- Merge heads + output projection (one GEMM, K = H*hd) + bias. ----
    attn = attn[:, :, :nq, :].transpose(0, 2, 1, 3).reshape(m, nq, inner)
    y = jnp.einsum('mne,ed->mnd', attn.astype(compute), wo.astype(compute),
                   preferred_element_type=jnp.float32)
    y = y + bo.astype(jnp.float32)
    return y.astype(out_dtype)


def reference_forward(xq, xk, xv, params, *, num_heads, head_dim):
    wq, wk, wv, wo, bo = params
    scale = float(head_dim) ** -0.5
    q = jnp.einsum('mnd,de->mne', xq, wq)
    k = jnp.einsum('mnd,de->mne', xk, wk)
    v = jnp.einsum('mnd,de->mne', xv, wv)

    def split(t):
        mm, n, _ = t.shape
        return t.reshape(mm, n, num_heads, head_dim).transpose(0, 2, 1, 3)

    qh, kh, vh = split(q), split(k), split(v)
    s = jnp.einsum('mhqd,mhkd->mhqk', qh, kh) * scale
    p = jax.nn.softmax(s, axis=-1)
    o = jnp.einsum('mhqk,mhkd->mhqd', p, vh)
    mm, h, n, hd = o.shape
    o = o.transpose(0, 2, 1, 3).reshape(mm, n, h * hd)
    return jnp.einsum('mne,ed->mnd', o, wo) + bo[0]


if __name__ == "__main__":
    # Small shapes consistent with the module's check_shapes contracts.
    m, nq, nkv = 2, 8, 8
    qk_dim, v_dim = 16, 32               # dqk, dv (embed_dim == v_dim)
    num_heads, head_dim = 2, 16
    inner = num_heads * head_dim

    key = jax.random.PRNGKey(0)
    ks = jax.random.split(key, 8)

    xq = jax.random.normal(ks[0], (m, nq, qk_dim), dtype=jnp.float32)
    xk = jax.random.normal(ks[1], (m, nkv, qk_dim), dtype=jnp.float32)
    xv = jax.random.normal(ks[2], (m, nkv, v_dim), dtype=jnp.float32)

    # nn.Linear computes x @ W.T; we store the already-transposed (in, out)
    # matrices.  Bias only on the to_out projection.
    wq = jax.random.normal(ks[3], (qk_dim, inner), dtype=jnp.float32) * 0.1
    wk = jax.random.normal(ks[4], (qk_dim, inner), dtype=jnp.float32) * 0.1
    wv = jax.random.normal(ks[5], (v_dim, inner), dtype=jnp.float32) * 0.1
    wo = jax.random.normal(ks[6], (inner, v_dim), dtype=jnp.float32) * 0.1
    bo = jax.random.normal(ks[7], (1, v_dim), dtype=jnp.float32) * 0.1
    params = (wq, wk, wv, wo, bo)

    ref = reference_forward(xq, xk, xv, params,
                            num_heads=num_heads, head_dim=head_dim)

    # f32 MXU-feed path (no padding: bq == nq, bkv == nkv, mask branch off).
    out_f32 = mha_layer_forward(xq, xk, xv, params, num_heads=num_heads,
                                head_dim=head_dim, mxu_dtype=jnp.float32)
    out_f32 = jax.block_until_ready(out_f32)
    assert out_f32.shape == (m, nq, v_dim)
    assert jnp.allclose(out_f32, ref, atol=2e-2, rtol=2e-2), "f32 path mismatch"

    # Default bf16 MXU-feed path; also exercises the padding + kv-mask path
    # (nq = nkv = 8 are padded up to the 16-row bf16 sublane minimum).
    out_bf16 = mha_layer_forward(xq, xk, xv, params, num_heads=num_heads,
                                 head_dim=head_dim)
    out_bf16 = jax.block_until_ready(out_bf16)
    assert out_bf16.shape == (m, nq, v_dim)
    assert jnp.allclose(out_bf16, ref, atol=6e-2, rtol=6e-2), "bf16 path mismatch"

    print("KERNEL_OK")
</pallas_src>

<mosaic_0001>
module attributes {stable_mosaic.version = 11 : i64} {
  func.func @_flash_attn_kernel(%arg0: i32, %arg1: i32, %arg2: i32, %arg3: memref<1x2x8x16xf32, #tpu.memory_space<vmem>>, %arg4: memref<1x2x8x16xf32, #tpu.memory_space<vmem>>, %arg5: memref<1x2x8x16xf32, #tpu.memory_space<vmem>>, %arg6: memref<1x2x8x16xf32, #tpu.memory_space<vmem>>, %arg7: memref<2x8x1xf32, #tpu.memory_space<vmem>>, %arg8: memref<2x8x1xf32, #tpu.memory_space<vmem>>, %arg9: memref<2x8x16xf32, #tpu.memory_space<vmem>>) attributes {dimension_semantics = [#tpu.dimension_semantics<parallel>, #tpu.dimension_semantics<parallel>, #tpu.dimension_semantics<arbitrary>], iteration_bounds = array<i64: 2, 1, 1>, scalar_prefetch = 0 : i64, scratch_operands = 3 : i64, tpu.core_type = #tpu.core_type<tc>, window_params = [{transform_indices = @transform_0, window_bounds = array<i64: 1, 2, 8, 16>}, {transform_indices = @transform_1, window_bounds = array<i64: 1, 2, 8, 16>}, {transform_indices = @transform_2, window_bounds = array<i64: 1, 2, 8, 16>}, {transform_indices = @transform_3, window_bounds = array<i64: 1, 2, 8, 16>}]} {
    %c0_i32 = arith.constant 0 : i32
    %0 = arith.cmpi eq, %arg2, %c0_i32 : i32
    %1 = arith.extui %0 : i1 to i32
    %c0_i32_0 = arith.constant 0 : i32
    %2 = arith.cmpi ne, %1, %c0_i32_0 : i32
    scf.if %2 {
      %cst_35 = arith.constant 0xFF800000 : f32
      %35 = vector.broadcast %cst_35 : f32 to vector<2x8x1xf32>
      %c0_36 = arith.constant 0 : index
      %c0_37 = arith.constant 0 : index
      %c0_38 = arith.constant 0 : index
      %36 = vector.load %arg7[%c0_36, %c0_37, %c0_38] : memref<2x8x1xf32, #tpu.memory_space<vmem>>, vector<2x8x1xf32>
      tpu.vector_store %arg7[%c0_36, %c0_37, %c0_38], %35 {strides = array<i32>} : memref<2x8x1xf32, #tpu.memory_space<vmem>>, vector<2x8x1xf32>,
      %cst_39 = arith.constant 0.000000e+00 : f32
      %37 = vector.broadcast %cst_39 : f32 to vector<2x8x1xf32>
      %c0_40 = arith.constant 0 : index
      %c0_41 = arith.constant 0 : index
      %c0_42 = arith.constant 0 : index
      %38 = vector.load %arg8[%c0_40, %c0_41, %c0_42] : memref<2x8x1xf32, #tpu.memory_space<vmem>>, vector<2x8x1xf32>
      tpu.vector_store %arg8[%c0_40, %c0_41, %c0_42], %37 {strides = array<i32>} : memref<2x8x1xf32, #tpu.memory_space<vmem>>, vector<2x8x1xf32>,
      %cst_43 = arith.constant 0.000000e+00 : f32
      %39 = vector.broadcast %cst_43 : f32 to vector<2x8x16xf32>
      %c0_44 = arith.constant 0 : index
      %c0_45 = arith.constant 0 : index
      %c0_46 = arith.constant 0 : index
      %40 = vector.load %arg9[%c0_44, %c0_45, %c0_46] : memref<2x8x16xf32, #tpu.memory_space<vmem>>, vector<2x8x16xf32>
      tpu.vector_store %arg9[%c0_44, %c0_45, %c0_46], %39 {strides = array<i32>} : memref<2x8x16xf32, #tpu.memory_space<vmem>>, vector<2x8x16xf32>,
    } else {
    }
    %c0 = arith.constant 0 : index
    %c0_1 = arith.constant 0 : index
    %c0_2 = arith.constant 0 : index
    %c0_3 = arith.constant 0 : index
    %3 = vector.load %arg3[%c0, %c0_1, %c0_2, %c0_3] : memref<1x2x8x16xf32, #tpu.memory_space<vmem>>, vector<1x2x8x16xf32>
    %4 = vector.shape_cast %3 : vector<1x2x8x16xf32> to vector<2x8x16xf32>
    %c0_4 = arith.constant 0 : index
    %c0_5 = arith.constant 0 : index
    %c0_6 = arith.constant 0 : index
    %c0_7 = arith.constant 0 : index
    %5 = vector.load %arg4[%c0_4, %c0_5, %c0_6, %c0_7] : memref<1x2x8x16xf32, #tpu.memory_space<vmem>>, vector<1x2x8x16xf32>
    %6 = vector.shape_cast %5 : vector<1x2x8x16xf32> to vector<2x8x16xf32>
    %c0_8 = arith.constant 0 : index
    %c0_9 = arith.constant 0 : index
    %c0_10 = arith.constant 0 : index
    %c0_11 = arith.constant 0 : index
    %7 = vector.load %arg5[%c0_8, %c0_9, %c0_10, %c0_11] : memref<1x2x8x16xf32, #tpu.memory_space<vmem>>, vector<1x2x8x16xf32>
    %8 = vector.shape_cast %7 : vector<1x2x8x16xf32> to vector<2x8x16xf32>
    "tpu.trace_start"() <{level = 10 : i32, message = "hqd,hkd->hqk"}> : () -> ()
    %cst = arith.constant dense<0.000000e+00> : vector<2x8x8xf32>
    %9 = tpu.matmul %4, %6, %cst {dimension_numbers = #tpu.dot_dimension_numbers<[2], [2], [1], [1], [0, 0, 0, 1, 1, 1], [0], [0]>} : vector<2x8x16xf32>, vector<2x8x16xf32>, vector<2x8x8xf32> -> vector<2x8x8xf32>
    "tpu.trace_stop"() : () -> ()
    %c0_12 = arith.constant 0 : index
    %c0_13 = arith.constant 0 : index
    %c0_14 = arith.constant 0 : index
    %10 = vector.load %arg7[%c0_12, %c0_13, %c0_14] : memref<2x8x1xf32, #tpu.memory_space<vmem>>, vector<2x8x1xf32>
    %cst_15 = arith.constant dense<0xFF800000> : vector<2x8xf32>
    %11 = vector.multi_reduction <maximumf>, %9, %cst_15 [2] : vector<2x8x8xf32> to vector<2x8xf32>
    %12 = vector.shape_cast %11 : vector<2x8xf32> to vector<2x8x1xf32>
    %13 = arith.maximumf %10, %12 : vector<2x8x1xf32>
    %14 = arith.subf %10, %13 : vector<2x8x1xf32>
    %15 = math.exp %14 : vector<2x8x1xf32>
    %16 = vector.broadcast %13 : vector<2x8x1xf32> to vector<2x8x8xf32>
    %17 = arith.subf %9, %16 : vector<2x8x8xf32>
    %18 = math.exp %17 : vector<2x8x8xf32>
    %c0_16 = arith.constant 0 : index
    %c0_17 = arith.constant 0 : index
    %c0_18 = arith.constant 0 : index
    %19 = vector.load %arg8[%c0_16, %c0_17, %c0_18] : memref<2x8x1xf32, #tpu.memory_space<vmem>>, vector<2x8x1xf32>
    %20 = arith.mulf %15, %19 : vector<2x8x1xf32>
    %cst_19 = arith.constant dense<0.000000e+00> : vector<2x8xf32>
    %21 = vector.multi_reduction <add>, %18, %cst_19 [2] : vector<2x8x8xf32> to vector<2x8xf32>
    %22 = vector.shape_cast %21 : vector<2x8xf32> to vector<2x8x1xf32>
    %23 = arith.addf %20, %22 : vector<2x8x1xf32>
    %c0_20 = arith.constant 0 : index
    %c0_21 = arith.constant 0 : index
    %c0_22 = arith.constant 0 : index
    %24 = vector.load %arg8[%c0_20, %c0_21, %c0_22] : memref<2x8x1xf32, #tpu.memory_space<vmem>>, vector<2x8x1xf32>
    tpu.vector_store %arg8[%c0_20, %c0_21, %c0_22], %23 {strides = array<i32>} : memref<2x8x1xf32, #tpu.memory_space<vmem>>, vector<2x8x1xf32>,
    %c0_23 = arith.constant 0 : index
    %c0_24 = arith.constant 0 : index
    %c0_25 = arith.constant 0 : index
    %25 = vector.load %arg9[%c0_23, %c0_24, %c0_25] : memref<2x8x16xf32, #tpu.memory_space<vmem>>, vector<2x8x16xf32>
    %26 = vector.broadcast %15 : vector<2x8x1xf32> to vector<2x8x16xf32>
    %27 = arith.mulf %26, %25 : vector<2x8x16xf32>
    "tpu.trace_start"() <{level = 10 : i32, message = "hqk,hkd->hqd"}> : () -> ()
    %cst_26 = arith.constant dense<0.000000e+00> : vector<2x8x16xf32>
    %28 = tpu.matmul %18, %8, %cst_26 {dimension_numbers = #tpu.dot_dimension_numbers<[2], [1], [1], [2], [0, 0, 0, 1, 1, 2], [0], [0]>} : vector<2x8x8xf32>, vector<2x8x16xf32>, vector<2x8x16xf32> -> vector<2x8x16xf32>
    "tpu.trace_stop"() : () -> ()
    %29 = arith.addf %27, %28 : vector<2x8x16xf32>
    %c0_27 = arith.constant 0 : index
    %c0_28 = arith.constant 0 : index
    %c0_29 = arith.constant 0 : index
    %30 = vector.load %arg9[%c0_27, %c0_28, %c0_29] : memref<2x8x16xf32, #tpu.memory_space<vmem>>, vector<2x8x16xf32>
    tpu.vector_store %arg9[%c0_27, %c0_28, %c0_29], %29 {strides = array<i32>} : memref<2x8x16xf32, #tpu.memory_space<vmem>>, vector<2x8x16xf32>,
    %c0_30 = arith.constant 0 : index
    %c0_31 = arith.constant 0 : index
    %c0_32 = arith.constant 0 : index
    %31 = vector.load %arg7[%c0_30, %c0_31, %c0_32] : memref<2x8x1xf32, #tpu.memory_space<vmem>>, vector<2x8x1xf32>
    tpu.vector_store %arg7[%c0_30, %c0_31, %c0_32], %13 {strides = array<i32>} : memref<2x8x1xf32, #tpu.memory_space<vmem>>, vector<2x8x1xf32>,
    %c0_i32_33 = arith.constant 0 : i32
    %32 = arith.cmpi eq, %arg2, %c0_i32_33 : i32
    %33 = arith.extui %32 : i1 to i32
    %c0_i32_34 = arith.constant 0 : i32
    %34 = arith.cmpi ne, %33, %c0_i32_34 : i32
    scf.if %34 {
      %c0_35 = arith.constant 0 : index
      %c0_36 = arith.constant 0 : index
      %c0_37 = arith.constant 0 : index
      %35 = vector.load %arg9[%c0_35, %c0_36, %c0_37] : memref<2x8x16xf32, #tpu.memory_space<vmem>>, vector<2x8x16xf32>
      %c0_38 = arith.constant 0 : index
      %c0_39 = arith.constant 0 : index
      %c0_40 = arith.constant 0 : index
      %36 = vector.load %arg8[%c0_38, %c0_39, %c0_40] : memref<2x8x1xf32, #tpu.memory_space<vmem>>, vector<2x8x1xf32>
      %37 = vector.broadcast %36 : vector<2x8x1xf32> to vector<2x8x16xf32>
      %38 = arith.divf %35, %37 : vector<2x8x16xf32>
      %c0_41 = arith.constant 0 : index
      %c0_42 = arith.constant 0 : index
      %c0_43 = arith.constant 0 : index
      %c0_44 = arith.constant 0 : index
      %39 = vector.load %arg6[%c0_41, %c0_42, %c0_43, %c0_44] : memref<1x2x8x16xf32, #tpu.memory_space<vmem>>, vector<1x2x8x16xf32>
      %40 = vector.shape_cast %39 : vector<1x2x8x16xf32> to vector<2x8x16xf32>
      %41 = vector.shape_cast %38 : vector<2x8x16xf32> to vector<1x2x8x16xf32>
      tpu.vector_store %arg6[%c0_41, %c0_42, %c0_43, %c0_44], %41 {strides = array<i32>} : memref<1x2x8x16xf32, #tpu.memory_space<vmem>>, vector<1x2x8x16xf32>,
    } else {
    }
    return
  }
  func.func @transform_0(%arg0: i32, %arg1: i32, %arg2: i32) -> (i32, i32, i32, i32) {
    %c0_i32 = arith.constant 0 : i32
    %c0_i32_0 = arith.constant 0 : i32
    %c0_i32_1 = arith.constant 0 : i32
    return %arg0, %c0_i32, %arg1, %c0_i32_0 : i32, i32, i32, i32
  }
  func.func @transform_1(%arg0: i32, %arg1: i32, %arg2: i32) -> (i32, i32, i32, i32) {
    %c0_i32 = arith.constant 0 : i32
    %c0_i32_0 = arith.constant 0 : i32
    %c0_i32_1 = arith.constant 0 : i32
    return %arg0, %c0_i32, %arg2, %c0_i32_0 : i32, i32, i32, i32
  }
  func.func @transform_2(%arg0: i32, %arg1: i32, %arg2: i32) -> (i32, i32, i32, i32) {
    %c0_i32 = arith.constant 0 : i32
    %c0_i32_0 = arith.constant 0 : i32
    %c0_i32_1 = arith.constant 0 : i32
    return %arg0, %c0_i32, %arg2, %c0_i32_0 : i32, i32, i32, i32
  }
  func.func @transform_3(%arg0: i32, %arg1: i32, %arg2: i32) -> (i32, i32, i32, i32) {
    %c0_i32 = arith.constant 0 : i32
    %c0_i32_0 = arith.constant 0 : i32
    %c0_i32_1 = arith.constant 0 : i32
    return %arg0, %c0_i32, %arg1, %c0_i32_0 : i32, i32, i32, i32
  }
}

</mosaic_0001>

<bundles_post_ra>
// kernel: tpu_custom_call.1
= control target key start
LH: loop header
LB: loop body
LE: loop exit
PB: predicated region body
PF: predicated region fallthrough
CT: control target
= control target key end

     0   :  { %s1456_s0 = inlined_call_operand.hbm [shape: f32[2,2,8,16], index: 0, kind: input, shape index: {}]   ;;  %s1457_s1 = inlined_call_operand.hbm [shape: f32[2,2,8,16], index: 1, kind: input, shape index: {}]   ;;  %s1458_s2 = inlined_call_operand.hbm [shape: f32[2,2,8,16], index: 2, kind: input, shape index: {}]   ;;  %s1459_s3 = inlined_call_operand.hbm [shape: f32[2,2,8,16], index: 3, kind: output, shape index: {}]  }
   0x1   :  { %1465 = sst [smem:[#allocation18_spill]] %s1457_s1 }
   0x2   :  { %8 = vsyncpa [#allocation6], 0 }
   0x3   :  { %10 = vsyncpa [#allocation6 + $0x1], 0 }
   0x4   :  { %11 = vsyncpa [#allocation9], 0 }
   0x5   :  { %13 = vsyncpa [#allocation9 + $0x1], 0 }
   0x6   :  { %14 = vsyncpa [#allocation7], 0 }
   0x7   :  { %16 = vsyncpa [#allocation7 + $0x1], 0  ;;  %s1211_s12 = smov 0   ;;  %s1213_s13 = smov 0  }
   0x8   :  { %s1215_s14 = smov 0   ;;  %s1217_s15 = smov 0  }
   0x9   :  { %s1219_s16 = smov 0   ;;  %s1221_s17 = smov 0  }
   0xa LB: > { %1466 = sst [smem:[#allocation15_spill]] %s1173_s16  ;;  %s1242_s18 = sadd.s32 4294967295, %s1177_s17   ;;  %s1177_s17 = sphi %s1221_s17, %s22_s17   ;;  %s1173_s16 = sphi %s1219_s16, %s1481_s16   ;;  %s1169_s15 = sphi %s1217_s15, %s1480_s15   ;;  %s1165_s14 = sphi %s1215_s14, %s1484_s14   ;;  %s1161_s13 = sphi %s1213_s13, %s1483_s13   ;;  %s1157_s12 = sphi %s1211_s12, %s1482_s12  }
   0xb   : > { %s855_s19 = sadd.s32 4294967294, %s1177_s17   ;;  %s41_s20 = sadd.s32 1, %s1173_s16 }
   0xc   : > { %s50_s21 = sadd.s32 1, %s1165_s14  ;;  %p43_p0 = scmp.ge.s32.totalorder %s41_s20, 2 }
   0xd   : > { %p57_p1 = scmp.ne.s32.totalorder %s1165_s14, %s1161_s13  ;;  %p58_p2 = scmp.eq.s32.totalorder %s1177_s17, 0 }
   0xe   : > { %p63_p3 = scmp.ne.s32.totalorder %s1161_s13, %s1157_s12  ;;  %s1486_s20 = smov (%p43_p0, %s41_s20), 0 }
   0xf   : > { %1467 = sst [smem:[#allocation16_spill]] %s1486_s20  ;;  %p1254_p4 = por %p58_p2, %p57_p1 }
  0x10   : > { %p64_p5 = scmp.eq.s32.totalorder %s1242_s18, 0  ;;  %s45_s23 = ssub.s32 %s1173_s16, %s1486_s20 }
  0x11   : > { %p145_p6 = scmp.eq.s32.totalorder %s1242_s18, 1  ;;  %p48_p7 = scmp.eq.s32.totalorder %s45_s23, 0 }
  0x12   : > { %p1262_p8 = por %p64_p5, %p63_p3  ;;  %p151_p10 = scmp.eq.s32.totalorder %s855_s19, 1 }
  0x13   : > { %p1266_p9 = por %p145_p6, %p57_p1  ;;  %p937_p13 = scmp.lt.s32.totalorder %s1177_s17, 2 }
  0x14   : > { %s1271_s26 = scalar_select %p48_p7, %s1165_s14, %s50_s21  }
  0x15   : > { %p1273_p11 = por %p151_p10, %p63_p3  ;;  %s1460_s28 = sand.u32 1, %s1165_s14  }
  0x16   : > { %1471 = sst [smem:[#allocation17_spill]] %s1271_s26  ;;  %s1282_s29 = sshll.u32 %s1460_s28, 4 }
  0x17   : > { %s1285_s30 = sshll.u32 %s1173_s16, 8  ;;  %p1289_p0 = pnand %p937_p13, %p1254_p4 }
  0x18   : > { %s193_s5 = sand.u32 1, %s1177_s17   ;;  %s1474_s1 = sld [smem:[#allocation18_spill]] }
  0x19   : > { %s197_s9 = scalar_lea.vmem [#allocation8], %s1282_s29  ;;  %p867_p1 = scmp.ge.s32.totalorder %s1177_s17, 1 }
  0x1a   : > { %s205_s10 = sshll.u32 %s197_s9, 4  ;;  %p235_p2 = scmp.lt.s32.totalorder %s1177_s17, 3  ;;  %s206_s10 = int_to_ptr.vmem [resolvable:$true] %s205_s10 }
  0x1b   : > { %s1301_s11 = scalar_lea.sflag [#allocation9], %s193_s5  ;;  %p1011_p3 = pneg %p1289_p0 }
  0x1c   : > { %s1022_s19 = scalar_lea.vmem %s206_s10, 256  ;;  %s1179_s21 = smov [#allocation8]  }
  0x1d   : > { %p1023_p4 = scmp.ne.s32.totalorder %s206_s10, %s1022_s19  ;;  %s1027_s22 = sshll.u32 %s1179_s21, 4  ;;  %s1028_s22 = int_to_ptr.vmem [resolvable:$false] %s1027_s22 }
  0x1e   : > { %s204_s8 = scalar_lea.hbm %s1474_s1, %s1285_s30  ;;  %s1029_s23 = scalar_lea.vmem %s1028_s22, 512 }
  0x1f   : > { %p1025_p5 = pnand %p1023_p4, %p1011_p3  ;;  %p1030_p7 = scmp.lt.s32.totalorder %s206_s10, %s1028_s22 }
  0x20   : > { %p1031_p10 = scmp.lt.s32.totalorder %s1029_s23, %s1022_s19 }
  0x21   : > { %p1026_p6 = pneg %p1025_p5 }
  0x22   : > { %p1032_p13 = por %p1031_p10, %p1030_p7 }
  0x24   : > { %p1033_p12 = pnand %p1032_p13, %p1026_p6 }
  0x26   : > { %1036 = shalt.err (!%p1033_p12)
}
  0x27   : > { %s1463_s6 = smov 128   ;;  %s1181_s5 = smov 8  }
  0x28   : > { %929 = dma.hbm_to_vmem [thread:$0]  (!%p1289_p0), %s204_s8, 256, %s206_s10, %s1301_s11, %s1463_s6, %s1463_s6, %s1181_s5  }
  0x29   : > { %p1318_p4 = pnand %p867_p1, %p235_p2  ;;  %s182_s21 = scalar_lea.hbm %s1456_s0, %s1285_s30 }
  0x2a   : > { %s175_s22 = scalar_lea.vmem [#allocation5], %s1282_s29  ;;  %s226_s20 = scalar_lea.hbm %s1458_s2, %s1285_s30 }
  0x2b   : > { %s183_s23 = sshll.u32 %s175_s22, 4  ;;  %s1476_s16 = sand.u32 1, %s1165_s14   ;;  %s184_s23 = int_to_ptr.vmem [resolvable:$true] %s183_s23 }
  0x2c   : > { %s172_s26 = scalar_lea.sflag [#allocation6], %s1476_s16  ;;  %s1050_s8 = scalar_lea.vmem %s184_s23, 256 }
  0x2d   : > { %p1051_p12 = scmp.ne.s32.totalorder %s184_s23, %s1050_s8  ;;  %s1182_s10 = smov [#allocation5]  }
  0x2e   : > { %s1055_s6 = sshll.u32 %s1182_s10, 4  ;;  %s1056_s6 = int_to_ptr.vmem [resolvable:$false] %s1055_s6 }
  0x2f   : > { %p1053_p1 = pnand %p1051_p12, %p1011_p3  ;;  %s1057_s9 = scalar_lea.vmem %s1056_s6, 512 }
  0x30   : > { %p1058_p5 = scmp.lt.s32.totalorder %s184_s23, %s1056_s6  ;;  %p1059_p6 = scmp.lt.s32.totalorder %s1057_s9, %s1050_s8 }
  0x31   : > { %p1054_p2 = pneg %p1053_p1 }
  0x32   : > { %p1060_p7 = por %p1059_p6, %p1058_p5 }
  0x34   : > { %p1061_p10 = pnand %p1060_p7, %p1054_p2 }
  0x36   : > { %1064 = shalt.err (!%p1061_p10)
}
  0x37   : > { %s1477_s1 = smov 128   ;;  %s219_s16 = scalar_lea.vmem [#allocation10], %s1282_s29 }
  0x38   : > { %926 = dma.hbm_to_vmem [thread:$0]  (!%p1289_p0), %s182_s21, 256, %s184_s23, %s172_s26, %s1477_s1, %s1477_s1, %s1181_s5  }
  0x39   : > { %s227_s28 = sshll.u32 %s219_s16, 4  ;;  %s1183_s6 = smov [#allocation10]   ;;  %s228_s28 = int_to_ptr.vmem [resolvable:$true] %s227_s28 }
  0x3a   : > { %s1078_s19 = scalar_lea.vmem %s228_s28, 256  ;;  %s1083_s22 = sshll.u32 %s1183_s6, 4  ;;  %s1084_s22 = int_to_ptr.vmem [resolvable:$false] %s1083_s22 }
  0x3b   : > { %p1079_p13 = scmp.ne.s32.totalorder %s228_s28, %s1078_s19  ;;  %s1085_s8 = scalar_lea.vmem %s1084_s22, 512 }
  0x3c   : > { %p1086_p2 = scmp.lt.s32.totalorder %s228_s28, %s1084_s22  ;;  %p1087_p5 = scmp.lt.s32.totalorder %s1085_s8, %s1078_s19 }
  0x3d   : > { %p1081_p12 = pnand %p1079_p13, %p1011_p3 }
  0x3e   : > { %p1088_p6 = por %p1087_p5, %p1086_p2 }
  0x3f   : > { %p1082_p1 = pneg %p1081_p12 }
  0x41   : > { %p1089_p7 = pnand %p1088_p6, %p1082_p1 }
  0x43   : > { %1092 = shalt.err (!%p1089_p7)
}
  0x44   : > { %932 = dma.hbm_to_vmem [thread:$0]  (!%p1289_p0), %s226_s20, 256, %s228_s28, %s1301_s11, %s1477_s1, %s1477_s1, %s1181_s5  }
  0x45   : > { %239 = sbr.rel (%p1318_p4) target bundleno = 869 (0x365), region = 32  ;;  %s1359_s21 = sand.u32 (!%p1318_p4), 1, %s1161_s13  }
  0x46   : > { %s1362_s4 = sshll.u32 (!%p1318_p4), %s1359_s21, 4  ;;  %s242_s23 = scalar_lea.sflag (!%p1318_p4), [#allocation6], %s1359_s21 }
  0x47   : > { %s245_s10 = scalar_lea.vmem (!%p1318_p4), [#allocation5], %s1362_s4 }
  0x4a   : > { %1144 = dma.done.wait (%p1262_p8), %s242_s23, 256  }
  0x4b   : > { %1146 = vsyncadd (%p1262_p8), %s242_s23, 4294967040  ;;  %s250_s20 = sand.u32 1, %s1242_s18   ;;  %s254_s11 = scalar_lea.vmem [#allocation8], %s1362_s4 }
  0x4c   : > { %s251_s30 = scalar_lea.sflag [#allocation9], %s250_s20 }
  0x4d   : > { %1148 = dma.done.wait (%p1262_p8), %s251_s30, 512  }
  0x4e   : > { %1150 = vsyncadd (%p1262_p8), %s251_s30, 4294966784  ;;  %vm305_vm0 = vcmask 130048   ;;  %v1184_v0 = vmov 0.0   ;;  %vm1185_vm1 = vmmov 0   ;;  %v310_v1 = vld [vmem:[%s254_s11] sm:$0xff]  ;;  %v311_v2 = vld [vmem:[%s254_s11 + $0x8] sm:$0xff] }
  0x4f   : > { %895 = vmatprep.subr.mxu0 %v1184_v0  ;;  %306 = vst.msk [vmem:[#allocation4] sm:$0xff] %vm305_vm0, %v1184_v0  ;;  %307 = vst.msk [vmem:[#allocation4 + $0x8] sm:$0xff] %vm305_vm0, %v1184_v0  ;;  %897 = vmatprep.mubr.msk.f32.mxu0 %vm1185_vm1, %v1184_v0  ;;  %v308_v3 = vld [vmem:[%s245_s10] sm:$0xff]  ;;  %v309_v4 = vld [vmem:[%s245_s10 + $0x8] sm:$0xff]  ;;  %vm300_vm2 = vcmask 7168   ;;  %v1186_v5 = vmov -inf  }
  0x50   : > { %900 = vmatprep.subr.mxu1 %v1184_v0  ;;  %902 = vmatprep.mubr.msk.f32.mxu1 %vm1185_vm1, %v1184_v0  ;;  %301 = vst.msk [vmem:[#allocation2] sm:$0xff] %vm300_vm2, %v1186_v5  ;;  %302 = vst.msk [vmem:[#allocation2 + $0x8] sm:$0xff] %vm300_vm2, %v1186_v5  ;;  %vm469_vm3 = vcmask 64512   ;;  %v1187_v12 = vmov 0   ;;  %s263_s18 = scalar_lea.vmem [#allocation10], %s1362_s4  ;;  %s886_s24 = sshll.u32 %s1169_s15, 8 }
  0x51   : > { %896 = vmatpush3.xpose.msk.msra.mxu0 %vm305_vm0, %v310_v1  ;;  %901 = vmatpush3.xpose.msk.msra.mxu1 %vm305_vm0, %v311_v2  ;;  %303 = vst.msk [vmem:[#allocation3] sm:$0xff] %vm300_vm2, %v1184_v0  ;;  %304 = vst.msk [vmem:[#allocation3 + $0x8] sm:$0xff] %vm300_vm2, %v1184_v0  ;;  %v312_v21 = vld [vmem:[%s263_s18] sm:$0xff]  ;;  %v313_v22 = vld [vmem:[%s263_s18 + $0x8] sm:$0xff]  ;;  %s295_s5 = scalar_lea.vmem [#allocation11], %s1362_s4  ;;  %s1405_s16 = scalar_lea.hbm %s1459_s3, %s886_s24 }
  0x52   : > { %905 = vmatprep.subr.mxu0 %v1184_v0  ;;  %910 = vmatprep.subr.mxu1 %v1184_v0  ;;  %s719_s7 = sshll.u32 %s295_s5, 4  ;;  %s705_s15 = scalar_lea.sflag [#allocation7], %s1359_s21  ;;  %s1407_s7 = int_to_ptr.vmem [resolvable:$true] %s719_s7 }
  0x53   : > { %995 = vset.pattern.permute.xlu1 %v1187_v12  ;;  %996 = vset.pattern.permute.xlu0 %v1187_v12  ;;  %s1093_s28 = scalar_lea.vmem %s1407_s7, 256  ;;  %s1188_s19 = smov [#allocation11]  }
  0x54   : > { %898 = vmatmul.mubr.msk.f32.vlgmr.msra.gmra.mxu0 %vm305_vm0, %v308_v3  ;;  %903 = vmatmul.mubr.msk.f32.vlgmr.msra.gmra.mxu1 %vm305_vm0, %v309_v4  ;;  %p1094_p8 = scmp.ne.s32.totalorder %s1407_s7, %s1093_s28  ;;  %s1097_s6 = sshll.u32 %s1188_s19, 4  ;;  %s1098_s6 = int_to_ptr.vmem [resolvable:$false] %s1097_s6 }
  0x55   : > { %907 = vmatprep.mubr.msk.f32.mxu0 %vm1185_vm1, %v1184_v0  ;;  %912 = vmatprep.mubr.msk.f32.mxu1 %vm1185_vm1, %v1184_v0  ;;  %s1099_s22 = scalar_lea.vmem %s1098_s6, 512  ;;  %p1100_p4 = scmp.lt.s32.totalorder %s1407_s7, %s1098_s6 }
  0x56   : > { %906 = vmatpush3.msra.mxu0 %v312_v21  ;;  %911 = vmatpush3.msra.mxu1 %v313_v22  ;;  %v515_v52 = vld [vmem:[#allocation4] sm:$0xff]  ;;  %v516_v56 = vld [vmem:[#allocation4 + $0x8] sm:$0xff]  ;;  %p1095_p0 = pnand %p1094_p8, %p1266_p9  ;;  %p1101_p10 = scmp.lt.s32.totalorder %s1099_s22, %s1093_s28 }
  0x57   : > { %v467_v13 = vld [vmem:[#allocation2] sm:$0xff]  ;;  %v468_v16 = vld [vmem:[#allocation2 + $0x8] sm:$0xff] }
  0x58   : > { %v500_v36 = vld [vmem:[#allocation3] sm:$0xff]  ;;  %v501_v40 = vld [vmem:[#allocation3 + $0x8] sm:$0xff]  ;;  %p1096_p3 = pneg %p1095_p0  ;;  %p1102_p13 = por %p1101_p10, %p1100_p4 }
  0x5a   : > { %p1103_p12 = pnand %p1102_p13, %p1096_p3 }
 0x114   : > { %v387_v6 = vpop.f32.mrf.mxu0  ;;  %v463_v7 = vpop.f32.mrf.mxu1 }
 0x115   : > { %v470_v8 = vsel %vm469_vm3, %v387_v6, -inf  ;;  %v473_v11 = vsel %vm469_vm3, %v463_v7, -inf }
 0x116   : > { %471 = vmax.xlane.f32.xlu0 %v470_v8  ;;  %v899_v9 = vpop.f32.mrf.mxu0  ;;  %v904_v10 = vpop.f32.mrf.mxu1 }
 0x11a   : > { %474 = vmax.xlane.f32.xlu0 %v473_v11 }
 0x19f   : > { %v472_v14 = vpop.xlane.xlu0 %471 }
 0x1a0   : > { %v476_v15 = vmax.f32 %v467_v13, %v472_v14 }
 0x1a2   : > { %v478_v17 = vsub.f32 %v467_v13, %v476_v15  ;;  %679 = vst.msk [vmem:[#allocation2] sm:$0xff] %vm300_vm2, %v476_v15  ;;  %486 = vperm.xlu1 %995, %v476_v15  }
 0x1a3   : > { %v475_v18 = vpop.xlane.xlu0 %474 }
 0x1a4   : > { %v477_v19 = vmax.f32 %v468_v16, %v475_v18  ;;  %v480_v33 = vmul.f32 1.442695, %v478_v17 }
 0x1a6   : > { %v479_v20 = vsub.f32 %v468_v16, %v477_v19  ;;  %680 = vst.msk [vmem:[#allocation2 + $0x8] sm:$0xff] %vm300_vm2, %v477_v19  ;;  %491 = vperm.xlu1 %995, %v477_v19  }
 0x1a8   : > { %v482_v34 = vmul.f32 1.442695, %v479_v20 }
 0x21d   : > { %v487_v23 = vpop.permute.xlu1 %486 }
 0x21e   : > { %v494_v24 = vsub.f32 %v387_v6, %v487_v23 }
 0x220   : > { %v496_v25 = vmul.f32 1.442695, %v494_v24 }
 0x221   : > { %v492_v26 = vpop.permute.xlu1 %491 }
 0x222   : > { %997 = vpow2.f32 %v496_v25  ;;  %v495_v27 = vsub.f32 %v463_v7, %v492_v26 }
 0x224   : > { %v498_v28 = vmul.f32 1.442695, %v495_v27 }
 0x226   : > { %999 = vpow2.f32 %v498_v28 }
 0x227   : > { %1001 = vpow2.f32 %v480_v33 }
 0x228   : > { %1003 = vpow2.f32 %v482_v34 }
 0x22f   : > { %v998_v29 = vpop.eup %997 }
 0x230   : > { %908 = vmatmul.mubr.msk.f32.vlgmr.msra.gmra.mxu0 %vm469_vm3, %v998_v29  ;;  %v504_v30 = vsel %vm469_vm3, %v998_v29, 0.0 }
 0x231   : > { %505 = vadd.xlane.f32.xlu0 %v504_v30 }
 0x233   : > { %v1000_v31 = vpop.eup %999 }
 0x234   : > { %913 = vmatmul.mubr.msk.f32.vlgmr.msra.gmra.mxu1 %vm469_vm3, %v1000_v31  ;;  %v507_v32 = vsel %vm469_vm3, %v1000_v31, 0.0  ;;  %v1002_v35 = vpop.eup %1001 }
 0x235   : > { %508 = vadd.xlane.f32.xlu1 %v507_v32  ;;  %v502_v37 = vmul.f32 %v1002_v35, %v500_v36  ;;  %v1004_v38 = vpop.eup %1003 }
 0x236   : > { %v503_v42 = vmul.f32 %v1004_v38, %v501_v40 }
 0x2ba   : > { %v506_v39 = vpop.xlane.xlu0 %505 }
 0x2bb   : > { %v510_v41 = vadd.f32 %v506_v39, %v502_v37 }
 0x2bd   : > { %513 = vst.msk [vmem:[#allocation3] sm:$0xff] %vm300_vm2, %v510_v41 }
 0x2be   : > { %v509_v43 = vpop.xlane.xlu1 %508 }
 0x2bf   : > { %v511_v44 = vadd.f32 %v509_v43, %v503_v42 }
 0x2c1   : > { %514 = vst.msk [vmem:[#allocation3 + $0x8] sm:$0xff] %vm300_vm2, %v511_v44 }
 0x2c4   : > { %v686_v45 = vld [vmem:[#allocation3] sm:$0xff] }
 0x2c5   : > { %690 = vperm.xlu0 %996, %v686_v45  }
 0x2c8   : > { %v687_v46 = vld [vmem:[#allocation3 + $0x8] sm:$0xff] }
 0x2c9   : > { %695 = vperm.xlu1 %995, %v687_v46   ;;  %519 = vperm.xlu0 %996, %v1002_v35  }
 0x2cd   : > { %524 = vperm.xlu0 %996, %v1004_v38  }
 0x2f0   : > { %v598_v47 = vpop.f32.mrf.mxu0 }
 0x2f2   : > { %v909_v48 = vpop.f32.mrf.mxu0 }
 0x2f4   : > { %v671_v49 = vpop.f32.mrf.mxu1 }
 0x2f6   : > { %v914_v50 = vpop.f32.mrf.mxu1 }
 0x340   : > { %v691_v51 = vpop.permute.xlu0 %690 }
 0x341   : > { %1005 = vrcp.f32 %v691_v51 }
 0x344   : > { %v696_v53 = vpop.permute.xlu1 %695  ;;  %v520_v54 = vpop.permute.xlu0 %519 }
 0x345   : > { %v527_v55 = vmul.f32 %v520_v54, %v515_v52  ;;  %1007 = vrcp.f32 %v696_v53 }
 0x347   : > { %v675_v57 = vadd.f32 %v598_v47, %v527_v55 }
 0x348   : > { %v525_v58 = vpop.permute.xlu0 %524 }
 0x349   : > { %677 = vst.msk [vmem:[#allocation4] sm:$0xff] %vm305_vm0, %v675_v57  ;;  %v528_v59 = vmul.f32 %v525_v58, %v516_v56 }
 0x34b   : > { %v676_v60 = vadd.f32 %v671_v49, %v528_v59 }
 0x34d   : > { %678 = vst.msk [vmem:[#allocation4 + $0x8] sm:$0xff] %vm305_vm0, %v676_v60 }
 0x34e   : > { %v1006_v61 = vpop.eup %1005 }
 0x350   : > { %v684_v62 = vld [vmem:[#allocation4] sm:$0xff] }
 0x351   : > { %v699_v63 = vmul.f32 %v1006_v61, %v684_v62 }
 0x352   : > { %v1008_v0 = vpop.eup %1007 }
 0x353   : > { %702 = vst.msk [vmem:[%s295_s5] sm:$0xff] %vm305_vm0, %v699_v63 }
 0x354   : > { %v685_v1 = vld [vmem:[#allocation4 + $0x8] sm:$0xff] }
 0x355   : > { %v701_v2 = vmul.f32 %v1008_v0, %v685_v1 }
 0x357   : > { %703 = vst.msk [vmem:[%s295_s5 + $0x8] sm:$0xff] %vm305_vm0, %v701_v2 }
 0x358   : > { %1106 = shalt.err (!%p1103_p12)
}
 0x359   : > { %s1107_s8 = scalar_lea.hbm %s1405_s16, 256  ;;  %s1111_s4 = scalar_lea.hbm %s1459_s3, 512 }
 0x35a   : > { %p1108_p1 = scmp.ne.s32.totalorder %s1405_s16, %s1107_s8  ;;  %p1112_p6 = scmp.lt.s32.totalorder %s1405_s16, %s1459_s3 }
 0x35b   : > { %p1113_p7 = scmp.lt.s32.totalorder %s1111_s4, %s1107_s8 }
 0x35c   : > { %p1109_p2 = pnand %p1108_p1, %p1266_p9 }
 0x35d   : > { %p1114_p8 = por %p1113_p7, %p1112_p6 }
 0x35e   : > { %p1110_p5 = pneg %p1109_p2 }
 0x360   : > { %p1115_p0 = pnand %p1114_p8, %p1110_p5 }
 0x362   : > { %1118 = shalt.err (!%p1115_p0)
}
 0x363   : > { %s1189_s20 = smov 128   ;;  %s1190_s30 = smov 8  }
 0x364   : > { %921 = dma.vmem_to_hbm [thread:$0]  (%p1266_p9), %s1407_s7, 256, %s1405_s16, %s705_s15, %s1189_s20, %s1189_s20, %s1190_s30  }
 0x365 PF: > { %s734_s11 = sand.u32 1, %s1157_s12   ;;  %p1478_p3 = scmp.ge.s32.totalorder %s1177_s17, 2 }
 0x366   : > { %s735_s18 = scalar_lea.sflag [#allocation7], %s734_s11 }
 0x367   : > { %p934_p4 = pnand %p1478_p3, %p1273_p11 }
 0x369   : > { %p935_p10 = pneg %p934_p4 }
 0x36b   : > { %1152 = dma.done.wait (%p935_p10), %s735_s18, 256  }
 0x36c   : > { %1154 = vsyncadd (%p935_p10), %s735_s18, 4294967040  ;;  %s22_s17 = sadd.s32 1, %s1177_s17   ;;  %s1479_s25 = sld [smem:[#allocation17_spill]] }
 0x36d   : > { %p19_p13 = scmp.ge.s32.totalorder %s22_s17, 4   ;;  %s1480_s15 = sld [smem:[#allocation15_spill]] }
 0x36e   : > { %s1481_s16 = sld [smem:[#allocation16_spill]]  ;;  %s1482_s12 = smov %s1161_s13 }
 0x36f   : > { %s1483_s13 = smov %s1165_s14  ;;  %21 = sbr.rel (!%p19_p13) target bundleno = 10 (0xa), region = 109 }
 0x372   : > { %s1484_s14 = smov %s1479_s25 }
 0x374   :  { %740 = vsyncpa [#allocation6], 1 }
 0x375   :  { %742 = vsyncpa [#allocation6 + $0x1], 1 }
 0x376   :  { %743 = vsyncpa [#allocation9], 1 }
 0x377   :  { %745 = vsyncpa [#allocation9 + $0x1], 1 }
 0x378   :  { %746 = vsyncpa [#allocation7], 1 }
 0x379   :  { %748 = vsyncpa [#allocation7 + $0x1], 1 }

</bundles_post_ra>
